<compile_context>
chip_gen: v6e
topology: v6e:2x2x1
jax: 0.10.0
libtpu: 0.0.40
codegen_flags: <defaults>
</compile_context>

<pallas_src>
import functools

import jax
import jax.numpy as jnp
from jax.experimental import pallas as pl
from jax.experimental.pallas import tpu as pltpu

_NEG = -1e30  # finite "-inf": avoids inf-inf / inf*0 NaNs in masked lanes


def bow_loss_kernel(x_ref, w1_ref, b1_ref, w2_ref, b2_ref, w3_ref, b3_ref,
                    tgts_ref, per_ex_ref,
                    h_sc, m_sc, l_sc, sdot_sc, den_sc, *,
                    vocab_size, block_v, mxu_dtype, mask_vocab):
    vk = pl.program_id(1)
    nv = pl.num_programs(1)

    # ---- vocab-invariant MLP: run once per batch tile, stash h in VMEM ----
    @pl.when(vk == 0)
    def _init():
        x = x_ref[...].astype(mxu_dtype)
        h = jnp.dot(x, w1_ref[...], preferred_element_type=jnp.float32) + b1_ref[...]
        h = jnp.maximum(h, 0.0)
        # TODO(synk): dropout is modeled as eval-mode identity (no RNG mask).
        h = jnp.dot(h.astype(mxu_dtype), w2_ref[...],
                    preferred_element_type=jnp.float32) + b2_ref[...]
        h_sc[...] = h.astype(h_sc.dtype)          # stored in mxu_dtype once
        m_sc[...] = jnp.full_like(m_sc, _NEG)
        l_sc[...] = jnp.zeros_like(l_sc)
        sdot_sc[...] = jnp.zeros_like(sdot_sc)
        den_sc[...] = jnp.zeros_like(den_sc)

    # ---- hid2vocab for this vocab tile (h_sc / w3 already in mxu_dtype) ----
    logits = jnp.dot(h_sc[...], w3_ref[...],
                     preferred_element_type=jnp.float32) + b3_ref[...]
    tgts = tgts_ref[...].astype(jnp.float32)      # narrow HBM stream -> f32 math

    if mask_vocab:
        # Ragged last vocab tile handled in-kernel (no wrapper jnp.pad copies):
        # lanes whose global column index >= vocab_size hold garbage -> mask.
        col = vk * block_v + jax.lax.broadcasted_iota(jnp.int32, (1, block_v), 1)
        lane_ok = col < vocab_size
        logits = jnp.where(lane_ok, logits, _NEG)
        tgts = jnp.where(lane_ok, tgts, 0.0)

    # ---- streaming (online) log-sum-exp, all f32 ----
    m_prev = m_sc[...]
    m_new = jnp.maximum(m_prev, jnp.max(logits, axis=-1, keepdims=True))
    alpha = jnp.exp(m_prev - m_new)
    l_sc[...] = alpha * l_sc[...] + jnp.sum(jnp.exp(logits - m_new),
                                            axis=-1, keepdims=True)
    m_sc[...] = m_new

    # ---- streaming numerator / denominator (shift-independent) ----
    sdot_sc[...] += jnp.sum(logits * tgts, axis=-1, keepdims=True)
    den_sc[...] += jnp.sum(tgts, axis=-1, keepdims=True)

    # ---- finalize once per batch tile ----
    @pl.when(vk == nv - 1)
    def _finalize():
        lse = m_sc[...] + jnp.log(l_sc[...])
        den = den_sc[...]
        safe_den = jnp.where(den > 0.0, den, 1.0)
        per_example = sdot_sc[...] / safe_den - lse
        # Zero rows with zero target count so they never pollute the mean.
        per_ex_ref[...] = jnp.where(den > 0.0, per_example, 0.0)


def _round_up(a, m):
    return (a + m - 1) // m * m


def bag_of_words_loss(x, w1, b1, w2, b2, w3, b3, tgts, *,
                      block_b=256, block_v=1024, min_batch_tiles=1,
                      mxu_dtype=jnp.float32, vmem_limit_bytes=None):
    """x: [B, D_in]; w*: [in, out]; b*: [1, out]; tgts: [B, V] -> scalar loss.

    block_b / block_v : batch-rows / vocab-lanes per tile.  Defaults (256/1024)
        target ~85%+ of HBM roofline; v5e can go to vt=512-1024, v6e up to
        vt=2048, v7x (64 MiB VMEM) should stay around vt=1024 (or use bf16
        w3/tgts to buy the lane width back).
    min_batch_tiles   : set 2 on v7x so the "parallel" batch axis shards across
        both TensorCores; leave 1 on v5e/v6e (single TC).
    mxu_dtype         : jnp.bfloat16 gives full-rate MXU + halves w3 traffic on
        all generations, but logits change slightly (won't meet a 1e-5 f32
        tolerance); softmax / accumulation stay f32 either way.
    tgts dtype        : pass bf16 / int8 counts when exact to narrow the
        dominant [B,V] HBM stream; cast to f32 happens inside the kernel.
    """
    B, d_in = x.shape
    mlp_h = w1.shape[1]
    hid = w2.shape[1]
    V = w3.shape[1]

    mxu_dtype = jnp.dtype(mxu_dtype)
    # Cast weights once here (not per vocab step inside the kernel).
    w1 = w1.astype(mxu_dtype)
    w2 = w2.astype(mxu_dtype)
    w3 = w3.astype(mxu_dtype)

    bt = min(block_b, _round_up(B, 8))
    if min_batch_tiles > 1:
        bt = min(bt, _round_up(pl.cdiv(B, min_batch_tiles), 8))
    vt = min(block_v, _round_up(V, 128))

    nb = pl.cdiv(B, bt)
    nv = pl.cdiv(V, vt)
    grid = (nb, nv)

    if vmem_limit_bytes is None:
        # Explicit VMEM budget: double-buffered input tiles + scratch, 2x headroom,
        # capped at 3/4 of physical VMEM (96 MiB v5e/v6e, 48 MiB v7x).
        mxu_b = mxu_dtype.itemsize
        tgt_b = jnp.dtype(tgts.dtype).itemsize
        x_b = jnp.dtype(x.dtype).itemsize
        est = 2 * (bt * d_in * x_b
                   + (d_in * mlp_h + mlp_h * hid) * mxu_b
                   + (mlp_h + hid + vt) * 4
                   + hid * vt * mxu_b
                   + bt * vt * tgt_b
                   + bt * 4)
        est += bt * hid * mxu_b + 4 * bt * 4
        try:
            phys = pltpu.get_tpu_info().vmem_capacity_bytes
        except Exception:
            phys = 64 << 20
        vmem_limit_bytes = int(min((phys * 3) // 4, max(32 << 20, 2 * est)))

    per_example = pl.pallas_call(
        functools.partial(bow_loss_kernel,
                          vocab_size=V, block_v=vt, mxu_dtype=mxu_dtype,
                          mask_vocab=(V % vt != 0)),
        out_shape=jax.ShapeDtypeStruct((nb * bt, 1), jnp.float32),
        grid_spec=pltpu.PrefetchScalarGridSpec(
            num_scalar_prefetch=0,
            grid=grid,
            in_specs=[
                pl.BlockSpec((bt, d_in), lambda b, v: (b, 0)),       # x
                pl.BlockSpec((d_in, mlp_h), lambda b, v: (0, 0)),    # w1
                pl.BlockSpec((1, mlp_h), lambda b, v: (0, 0)),       # b1
                pl.BlockSpec((mlp_h, hid), lambda b, v: (0, 0)),     # w2
                pl.BlockSpec((1, hid), lambda b, v: (0, 0)),         # b2
                pl.BlockSpec((hid, vt), lambda b, v: (0, v)),        # w3
                pl.BlockSpec((1, vt), lambda b, v: (0, v)),          # b3
                pl.BlockSpec((bt, vt), lambda b, v: (b, v)),         # tgts
            ],
            out_specs=pl.BlockSpec((bt, 1), lambda b, v: (b, 0)),
            scratch_shapes=[
                pltpu.VMEM((bt, hid), mxu_dtype),   # h (MLP out), vocab-invariant
                pltpu.VMEM((bt, 1), jnp.float32),   # running max m
                pltpu.VMEM((bt, 1), jnp.float32),   # running sum-exp l
                pltpu.VMEM((bt, 1), jnp.float32),   # running sum(logits * tgts)
                pltpu.VMEM((bt, 1), jnp.float32),   # running sum(tgts)
            ],
        ),
        # Vocab MUST stay the last, "arbitrary" axis: the scratch accumulators
        # rely on it being the innermost reduction loop.
        compiler_params=pltpu.CompilerParams(
            dimension_semantics=("parallel", "arbitrary"),
            vmem_limit_bytes=vmem_limit_bytes),
    )(x, w1, b1, w2, b2, w3, b3, tgts)

    return -jnp.sum(per_example[:B, 0]) / B


def _reference(x, w1, b1, w2, b2, w3, b3, tgts):
    h = jnp.maximum(x @ w1 + b1, 0.0)
    h = h @ w2 + b2
    logits = h @ w3 + b3
    logp = jax.nn.log_softmax(logits, axis=-1)
    return -jnp.mean(jnp.sum(logp * tgts, axis=1) / jnp.sum(tgts, axis=1))


if __name__ == "__main__":
    # Small synthetic shapes consistent with the module's __init__ signature.
    # B and VOCAB are deliberately NOT multiples of the tiles so the in-kernel
    # ragged-tile masking (vocab) and padded-output slicing (batch) paths are
    # exercised without any wrapper-side jnp.pad.
    B = 20                # batch
    INPUT_SIZE = 32       # input_size
    MLP_HIDDEN = 64       # mlp_hidden_size  (mlp_layer = 1)
    HIDDEN = 32           # hidden_size
    VOCAB = 1000          # vocab_size

    key = jax.random.PRNGKey(0)
    k = jax.random.split(key, 8)

    x = jax.random.normal(k[0], (B, INPUT_SIZE), dtype=jnp.float32)

    # Deterministic parameter init (weights stored [in, out]).
    w1 = 0.1 * jax.random.normal(k[1], (INPUT_SIZE, MLP_HIDDEN), dtype=jnp.float32)
    b1 = 0.1 * jax.random.normal(k[2], (1, MLP_HIDDEN), dtype=jnp.float32)
    w2 = 0.1 * jax.random.normal(k[3], (MLP_HIDDEN, HIDDEN), dtype=jnp.float32)
    b2 = 0.1 * jax.random.normal(k[4], (1, HIDDEN), dtype=jnp.float32)
    w3 = 0.1 * jax.random.normal(k[5], (HIDDEN, VOCAB), dtype=jnp.float32)
    b3 = 0.1 * jax.random.normal(k[6], (1, VOCAB), dtype=jnp.float32)

    # Bag-of-words target counts; every row has a nonzero sum.  Streamed to the
    # kernel as bf16 (exact for small integer counts -> halves the [B,V] HBM
    # stream); the f32 copy is only used by the reference.
    counts = jax.random.randint(k[7], (B, VOCAB), 0, 3).astype(jnp.float32)
    counts = counts.at[:, 0].add(1.0)
    tgts_bf16 = counts.astype(jnp.bfloat16)

    # Small tiles here so the 2-D grid (3 batch tiles x 4 vocab tiles, both
    # ragged) is actually exercised; real workloads use block_b>=256, block_v
    # 1024 (v7x) / up to 2048 (v6e), min_batch_tiles=2 on v7x.
    loss = bag_of_words_loss(x, w1, b1, w2, b2, w3, b3, tgts_bf16,
                             block_b=8, block_v=256)
    loss = jax.block_until_ready(loss)

    ref = _reference(x, w1, b1, w2, b2, w3, b3, counts)
    assert jnp.allclose(loss, ref, rtol=1e-5, atol=1e-5), (loss, ref)

    print("KERNEL_OK")
</pallas_src>

<mosaic_0001>
module attributes {stable_mosaic.version = 11 : i64} {
  func.func @bow_loss_kernel(%arg0: i32, %arg1: i32, %arg2: memref<8x32xf32, #tpu.memory_space<vmem>>, %arg3: memref<32x64xf32, #tpu.memory_space<vmem>>, %arg4: memref<1x64xf32, #tpu.memory_space<vmem>>, %arg5: memref<64x32xf32, #tpu.memory_space<vmem>>, %arg6: memref<1x32xf32, #tpu.memory_space<vmem>>, %arg7: memref<32x256xf32, #tpu.memory_space<vmem>>, %arg8: memref<1x256xf32, #tpu.memory_space<vmem>>, %arg9: memref<8x256xbf16, #tpu.memory_space<vmem>>, %arg10: memref<8x1xf32, #tpu.memory_space<vmem>>, %arg11: memref<8x32xf32, #tpu.memory_space<vmem>>, %arg12: memref<8x1xf32, #tpu.memory_space<vmem>>, %arg13: memref<8x1xf32, #tpu.memory_space<vmem>>, %arg14: memref<8x1xf32, #tpu.memory_space<vmem>>, %arg15: memref<8x1xf32, #tpu.memory_space<vmem>>) attributes {dimension_semantics = [#tpu.dimension_semantics<parallel>, #tpu.dimension_semantics<arbitrary>], iteration_bounds = array<i64: 3, 4>, scalar_prefetch = 0 : i64, scratch_operands = 5 : i64, tpu.core_type = #tpu.core_type<tc>, window_params = [{transform_indices = @transform_0, window_bounds = array<i64: 8, 32>}, {pipeline_mode = #tpu.pipeline_mode<synchronous>, transform_indices = @transform_1, window_bounds = array<i64: 32, 64>}, {pipeline_mode = #tpu.pipeline_mode<synchronous>, transform_indices = @transform_2, window_bounds = array<i64: 1, 64>}, {pipeline_mode = #tpu.pipeline_mode<synchronous>, transform_indices = @transform_3, window_bounds = array<i64: 64, 32>}, {pipeline_mode = #tpu.pipeline_mode<synchronous>, transform_indices = @transform_4, window_bounds = array<i64: 1, 32>}, {transform_indices = @transform_5, window_bounds = array<i64: 32, 256>}, {transform_indices = @transform_6, window_bounds = array<i64: 1, 256>}, {transform_indices = @transform_7, window_bounds = array<i64: 8, 256>}, {transform_indices = @transform_8, window_bounds = array<i64: 8, 1>}]} {
    %c0_i32 = arith.constant 0 : i32
    %0 = arith.cmpi eq, %arg1, %c0_i32 : i32
    %1 = arith.extui %0 : i1 to i32
    %c0_i32_0 = arith.constant 0 : i32
    %2 = arith.cmpi ne, %1, %c0_i32_0 : i32
    scf.if %2 {
      %c0_31 = arith.constant 0 : index
      %c0_32 = arith.constant 0 : index
      %55 = vector.load %arg2[%c0_31, %c0_32] : memref<8x32xf32, #tpu.memory_space<vmem>>, vector<8x32xf32>
      %c0_33 = arith.constant 0 : index
      %c0_34 = arith.constant 0 : index
      %56 = vector.load %arg3[%c0_33, %c0_34] : memref<32x64xf32, #tpu.memory_space<vmem>>, vector<32x64xf32>
      %cst_35 = arith.constant dense<0.000000e+00> : vector<8x64xf32>
      %57 = tpu.matmul %55, %56, %cst_35 {dimension_numbers = #tpu.dot_dimension_numbers<[1], [0], [0], [1], [0, 0, 1, 1], [], []>} : vector<8x32xf32>, vector<32x64xf32>, vector<8x64xf32> -> vector<8x64xf32>
      %c0_36 = arith.constant 0 : index
      %c0_37 = arith.constant 0 : index
      %58 = vector.load %arg4[%c0_36, %c0_37] : memref<1x64xf32, #tpu.memory_space<vmem>>, vector<1x64xf32>
      %59 = vector.broadcast %58 : vector<1x64xf32> to vector<8x64xf32>
      %60 = arith.addf %57, %59 : vector<8x64xf32>
      %cst_38 = arith.constant 0.000000e+00 : f32
      %61 = vector.broadcast %cst_38 : f32 to vector<8x64xf32>
      %62 = arith.maximumf %60, %61 : vector<8x64xf32>
      %c0_39 = arith.constant 0 : index
      %c0_40 = arith.constant 0 : index
      %63 = vector.load %arg5[%c0_39, %c0_40] : memref<64x32xf32, #tpu.memory_space<vmem>>, vector<64x32xf32>
      %cst_41 = arith.constant dense<0.000000e+00> : vector<8x32xf32>
      %64 = tpu.matmul %62, %63, %cst_41 {dimension_numbers = #tpu.dot_dimension_numbers<[1], [0], [0], [1], [0, 0, 1, 1], [], []>} : vector<8x64xf32>, vector<64x32xf32>, vector<8x32xf32> -> vector<8x32xf32>
      %c0_42 = arith.constant 0 : index
      %c0_43 = arith.constant 0 : index
      %65 = vector.load %arg6[%c0_42, %c0_43] : memref<1x32xf32, #tpu.memory_space<vmem>>, vector<1x32xf32>
      %66 = vector.broadcast %65 : vector<1x32xf32> to vector<8x32xf32>
      %67 = arith.addf %64, %66 : vector<8x32xf32>
      %c0_44 = arith.constant 0 : index
      %c0_45 = arith.constant 0 : index
      %68 = vector.load %arg11[%c0_44, %c0_45] : memref<8x32xf32, #tpu.memory_space<vmem>>, vector<8x32xf32>
      tpu.vector_store %arg11[%c0_44, %c0_45], %67 {strides = array<i32>} : memref<8x32xf32, #tpu.memory_space<vmem>>, vector<8x32xf32>,
      %cst_46 = arith.constant -1.000000e+30 : f32
      %69 = vector.broadcast %cst_46 : f32 to vector<8x1xf32>
      %c0_47 = arith.constant 0 : index
      %c0_48 = arith.constant 0 : index
      %70 = vector.load %arg12[%c0_47, %c0_48] : memref<8x1xf32, #tpu.memory_space<vmem>>, vector<8x1xf32>
      tpu.vector_store %arg12[%c0_47, %c0_48], %69 {strides = array<i32>} : memref<8x1xf32, #tpu.memory_space<vmem>>, vector<8x1xf32>,
      %cst_49 = arith.constant 0.000000e+00 : f32
      %71 = vector.broadcast %cst_49 : f32 to vector<8x1xf32>
      %c0_50 = arith.constant 0 : index
      %c0_51 = arith.constant 0 : index
      %72 = vector.load %arg13[%c0_50, %c0_51] : memref<8x1xf32, #tpu.memory_space<vmem>>, vector<8x1xf32>
      tpu.vector_store %arg13[%c0_50, %c0_51], %71 {strides = array<i32>} : memref<8x1xf32, #tpu.memory_space<vmem>>, vector<8x1xf32>,
      %cst_52 = arith.constant 0.000000e+00 : f32
      %73 = vector.broadcast %cst_52 : f32 to vector<8x1xf32>
      %c0_53 = arith.constant 0 : index
      %c0_54 = arith.constant 0 : index
      %74 = vector.load %arg14[%c0_53, %c0_54] : memref<8x1xf32, #tpu.memory_space<vmem>>, vector<8x1xf32>
      tpu.vector_store %arg14[%c0_53, %c0_54], %73 {strides = array<i32>} : memref<8x1xf32, #tpu.memory_space<vmem>>, vector<8x1xf32>,
      %cst_55 = arith.constant 0.000000e+00 : f32
      %75 = vector.broadcast %cst_55 : f32 to vector<8x1xf32>
      %c0_56 = arith.constant 0 : index
      %c0_57 = arith.constant 0 : index
      %76 = vector.load %arg15[%c0_56, %c0_57] : memref<8x1xf32, #tpu.memory_space<vmem>>, vector<8x1xf32>
      tpu.vector_store %arg15[%c0_56, %c0_57], %75 {strides = array<i32>} : memref<8x1xf32, #tpu.memory_space<vmem>>, vector<8x1xf32>,
    } else {
    }
    %c0 = arith.constant 0 : index
    %c0_1 = arith.constant 0 : index
    %3 = vector.load %arg11[%c0, %c0_1] : memref<8x32xf32, #tpu.memory_space<vmem>>, vector<8x32xf32>
    %c0_2 = arith.constant 0 : index
    %c0_3 = arith.constant 0 : index
    %4 = vector.load %arg7[%c0_2, %c0_3] : memref<32x256xf32, #tpu.memory_space<vmem>>, vector<32x256xf32>
    %cst = arith.constant dense<0.000000e+00> : vector<8x256xf32>
    %5 = tpu.matmul %3, %4, %cst {dimension_numbers = #tpu.dot_dimension_numbers<[1], [0], [0], [1], [0, 0, 1, 1], [], []>} : vector<8x32xf32>, vector<32x256xf32>, vector<8x256xf32> -> vector<8x256xf32>
    %c0_4 = arith.constant 0 : index
    %c0_5 = arith.constant 0 : index
    %6 = vector.load %arg8[%c0_4, %c0_5] : memref<1x256xf32, #tpu.memory_space<vmem>>, vector<1x256xf32>
    %7 = vector.broadcast %6 : vector<1x256xf32> to vector<8x256xf32>
    %8 = arith.addf %5, %7 : vector<8x256xf32>
    %c0_6 = arith.constant 0 : index
    %c0_7 = arith.constant 0 : index
    %9 = vector.load %arg9[%c0_6, %c0_7] : memref<8x256xbf16, #tpu.memory_space<vmem>>, vector<8x256xbf16>
    %10 = arith.extf %9 : vector<8x256xbf16> to vector<8x256xf32>
    %c256_i32 = arith.constant 256 : i32
    %11 = arith.muli %arg1, %c256_i32 : i32
    %12 = tpu.iota {dimensions = array<i32: 1>} : vector<1x256xi32>
    %13 = vector.broadcast %11 : i32 to vector<1x256xi32>
    %14 = arith.addi %13, %12 : vector<1x256xi32>
    %c1000_i32 = arith.constant 1000 : i32
    %15 = vector.broadcast %c1000_i32 : i32 to vector<1x256xi32>
    %16 = arith.cmpi slt, %14, %15 : vector<1x256xi32>
    %cst_8 = arith.constant -1.000000e+30 : f32
    %17 = vector.shape_cast %16 : vector<1x256xi1> to vector<1x256xi1>
    %18 = vector.broadcast %17 : vector<1x256xi1> to vector<8x256xi1>
    %19 = vector.broadcast %cst_8 : f32 to vector<8x256xf32>
    %20 = arith.select %18, %8, %19 : vector<8x256xi1>, vector<8x256xf32>
    %cst_9 = arith.constant 0.000000e+00 : f32
    %21 = vector.shape_cast %16 : vector<1x256xi1> to vector<1x256xi1>
    %22 = vector.broadcast %21 : vector<1x256xi1> to vector<8x256xi1>
    %23 = vector.broadcast %cst_9 : f32 to vector<8x256xf32>
    %24 = arith.select %22, %10, %23 : vector<8x256xi1>, vector<8x256xf32>
    %c0_10 = arith.constant 0 : index
    %c0_11 = arith.constant 0 : index
    %25 = vector.load %arg12[%c0_10, %c0_11] : memref<8x1xf32, #tpu.memory_space<vmem>>, vector<8x1xf32>
    %cst_12 = arith.constant dense<0xFF800000> : vector<8xf32>
    %26 = vector.multi_reduction <maximumf>, %20, %cst_12 [1] : vector<8x256xf32> to vector<8xf32>
    %27 = vector.shape_cast %26 : vector<8xf32> to vector<8x1xf32>
    %28 = arith.maximumf %25, %27 : vector<8x1xf32>
    %29 = arith.subf %25, %28 : vector<8x1xf32>
    %30 = math.exp %29 : vector<8x1xf32>
    %c0_13 = arith.constant 0 : index
    %c0_14 = arith.constant 0 : index
    %31 = vector.load %arg13[%c0_13, %c0_14] : memref<8x1xf32, #tpu.memory_space<vmem>>, vector<8x1xf32>
    %32 = arith.mulf %30, %31 : vector<8x1xf32>
    %33 = vector.broadcast %28 : vector<8x1xf32> to vector<8x256xf32>
    %34 = arith.subf %20, %33 : vector<8x256xf32>
    %35 = math.exp %34 : vector<8x256xf32>
    %cst_15 = arith.constant dense<0.000000e+00> : vector<8xf32>
    %36 = vector.multi_reduction <add>, %35, %cst_15 [1] : vector<8x256xf32> to vector<8xf32>
    %37 = vector.shape_cast %36 : vector<8xf32> to vector<8x1xf32>
    %38 = arith.addf %32, %37 : vector<8x1xf32>
    %c0_16 = arith.constant 0 : index
    %c0_17 = arith.constant 0 : index
    %39 = vector.load %arg13[%c0_16, %c0_17] : memref<8x1xf32, #tpu.memory_space<vmem>>, vector<8x1xf32>
    tpu.vector_store %arg13[%c0_16, %c0_17], %38 {strides = array<i32>} : memref<8x1xf32, #tpu.memory_space<vmem>>, vector<8x1xf32>,
    %c0_18 = arith.constant 0 : index
    %c0_19 = arith.constant 0 : index
    %40 = vector.load %arg12[%c0_18, %c0_19] : memref<8x1xf32, #tpu.memory_space<vmem>>, vector<8x1xf32>
    tpu.vector_store %arg12[%c0_18, %c0_19], %28 {strides = array<i32>} : memref<8x1xf32, #tpu.memory_space<vmem>>, vector<8x1xf32>,
    %c0_20 = arith.constant 0 : index
    %c0_21 = arith.constant 0 : index
    %41 = vector.load %arg14[%c0_20, %c0_21] : memref<8x1xf32, #tpu.memory_space<vmem>>, vector<8x1xf32>
    %42 = arith.mulf %20, %24 : vector<8x256xf32>
    %cst_22 = arith.constant dense<0.000000e+00> : vector<8xf32>
    %43 = vector.multi_reduction <add>, %42, %cst_22 [1] : vector<8x256xf32> to vector<8xf32>
    %44 = vector.shape_cast %43 : vector<8xf32> to vector<8x1xf32>
    %45 = arith.addf %41, %44 : vector<8x1xf32>
    %c0_23 = arith.constant 0 : index
    %c0_24 = arith.constant 0 : index
    %46 = vector.load %arg14[%c0_23, %c0_24] : memref<8x1xf32, #tpu.memory_space<vmem>>, vector<8x1xf32>
    tpu.vector_store %arg14[%c0_23, %c0_24], %45 {strides = array<i32>} : memref<8x1xf32, #tpu.memory_space<vmem>>, vector<8x1xf32>,
    %c0_25 = arith.constant 0 : index
    %c0_26 = arith.constant 0 : index
    %47 = vector.load %arg15[%c0_25, %c0_26] : memref<8x1xf32, #tpu.memory_space<vmem>>, vector<8x1xf32>
    %cst_27 = arith.constant dense<0.000000e+00> : vector<8xf32>
    %48 = vector.multi_reduction <add>, %24, %cst_27 [1] : vector<8x256xf32> to vector<8xf32>
    %49 = vector.shape_cast %48 : vector<8xf32> to vector<8x1xf32>
    %50 = arith.addf %47, %49 : vector<8x1xf32>
    %c0_28 = arith.constant 0 : index
    %c0_29 = arith.constant 0 : index
    %51 = vector.load %arg15[%c0_28, %c0_29] : memref<8x1xf32, #tpu.memory_space<vmem>>, vector<8x1xf32>
    tpu.vector_store %arg15[%c0_28, %c0_29], %50 {strides = array<i32>} : memref<8x1xf32, #tpu.memory_space<vmem>>, vector<8x1xf32>,
    %c3_i32 = arith.constant 3 : i32
    %52 = arith.cmpi eq, %arg1, %c3_i32 : i32
    %53 = arith.extui %52 : i1 to i32
    %c0_i32_30 = arith.constant 0 : i32
    %54 = arith.cmpi ne, %53, %c0_i32_30 : i32
    scf.if %54 {
      %c0_31 = arith.constant 0 : index
      %c0_32 = arith.constant 0 : index
      %55 = vector.load %arg12[%c0_31, %c0_32] : memref<8x1xf32, #tpu.memory_space<vmem>>, vector<8x1xf32>
      %c0_33 = arith.constant 0 : index
      %c0_34 = arith.constant 0 : index
      %56 = vector.load %arg13[%c0_33, %c0_34] : memref<8x1xf32, #tpu.memory_space<vmem>>, vector<8x1xf32>
      %57 = math.log %56 : vector<8x1xf32>
      %58 = arith.addf %55, %57 : vector<8x1xf32>
      %c0_35 = arith.constant 0 : index
      %c0_36 = arith.constant 0 : index
      %59 = vector.load %arg15[%c0_35, %c0_36] : memref<8x1xf32, #tpu.memory_space<vmem>>, vector<8x1xf32>
      %cst_37 = arith.constant 0.000000e+00 : f32
      %60 = vector.broadcast %cst_37 : f32 to vector<8x1xf32>
      %61 = arith.cmpf ogt, %59, %60 : vector<8x1xf32>
      %cst_38 = arith.constant 1.000000e+00 : f32
      %62 = vector.broadcast %cst_38 : f32 to vector<8x1xf32>
      %63 = arith.select %61, %59, %62 : vector<8x1xi1>, vector<8x1xf32>
      %c0_39 = arith.constant 0 : index
      %c0_40 = arith.constant 0 : index
      %64 = vector.load %arg14[%c0_39, %c0_40] : memref<8x1xf32, #tpu.memory_space<vmem>>, vector<8x1xf32>
      %65 = arith.divf %64, %63 : vector<8x1xf32>
      %66 = arith.subf %65, %58 : vector<8x1xf32>
      %cst_41 = arith.constant 0.000000e+00 : f32
      %67 = vector.broadcast %cst_41 : f32 to vector<8x1xf32>
      %68 = arith.cmpf ogt, %59, %67 : vector<8x1xf32>
      %cst_42 = arith.constant 0.000000e+00 : f32
      %69 = vector.broadcast %cst_42 : f32 to vector<8x1xf32>
      %70 = arith.select %68, %66, %69 : vector<8x1xi1>, vector<8x1xf32>
      %c0_43 = arith.constant 0 : index
      %c0_44 = arith.constant 0 : index
      %71 = vector.load %arg10[%c0_43, %c0_44] : memref<8x1xf32, #tpu.memory_space<vmem>>, vector<8x1xf32>
      tpu.vector_store %arg10[%c0_43, %c0_44], %70 {strides = array<i32>} : memref<8x1xf32, #tpu.memory_space<vmem>>, vector<8x1xf32>,
    } else {
    }
    return
  }
  func.func @transform_0(%arg0: i32, %arg1: i32) -> (i32, i32) {
    %c0_i32 = arith.constant 0 : i32
    %c0_i32_0 = arith.constant 0 : i32
    return %arg0, %c0_i32 : i32, i32
  }
  func.func @transform_1(%arg0: i32, %arg1: i32) -> (i32, i32) {
    %c0_i32 = arith.constant 0 : i32
    %c0_i32_0 = arith.constant 0 : i32
    %c0_i32_1 = arith.constant 0 : i32
    return %c0_i32, %c0_i32_0 : i32, i32
  }
  func.func @transform_2(%arg0: i32, %arg1: i32) -> (i32, i32) {
    %c0_i32 = arith.constant 0 : i32
    %c0_i32_0 = arith.constant 0 : i32
    %c0_i32_1 = arith.constant 0 : i32
    return %c0_i32, %c0_i32_0 : i32, i32
  }
  func.func @transform_3(%arg0: i32, %arg1: i32) -> (i32, i32) {
    %c0_i32 = arith.constant 0 : i32
    %c0_i32_0 = arith.constant 0 : i32
    %c0_i32_1 = arith.constant 0 : i32
    return %c0_i32, %c0_i32_0 : i32, i32
  }
  func.func @transform_4(%arg0: i32, %arg1: i32) -> (i32, i32) {
    %c0_i32 = arith.constant 0 : i32
    %c0_i32_0 = arith.constant 0 : i32
    %c0_i32_1 = arith.constant 0 : i32
    return %c0_i32, %c0_i32_0 : i32, i32
  }
  func.func @transform_5(%arg0: i32, %arg1: i32) -> (i32, i32) {
    %c0_i32 = arith.constant 0 : i32
    %c0_i32_0 = arith.constant 0 : i32
    return %c0_i32, %arg1 : i32, i32
  }
  func.func @transform_6(%arg0: i32, %arg1: i32) -> (i32, i32) {
    %c0_i32 = arith.constant 0 : i32
    %c0_i32_0 = arith.constant 0 : i32
    return %c0_i32, %arg1 : i32, i32
  }
  func.func @transform_7(%arg0: i32, %arg1: i32) -> (i32, i32) {
    %c0_i32 = arith.constant 0 : i32
    return %arg0, %arg1 : i32, i32
  }
  func.func @transform_8(%arg0: i32, %arg1: i32) -> (i32, i32) {
    %c0_i32 = arith.constant 0 : i32
    %c0_i32_0 = arith.constant 0 : i32
    return %arg0, %c0_i32 : i32, i32
  }
}

</mosaic_0001>

<bundles_post_ra>
// kernel: tpu_custom_call.1
= control target key start
LH: loop header
LB: loop body
LE: loop exit
PB: predicated region body
PF: predicated region fallthrough
CT: control target
= control target key end

     0   :  { %s1691_s0 = inlined_call_operand.hbm [shape: f32[20,32], index: 0, kind: input, shape index: {}]   ;;  %s1692_s1 = inlined_call_operand.hbm [shape: f32[32,64], index: 1, kind: input, shape index: {}]   ;;  %s1693_s2 = inlined_call_operand.vmem [shape: f32[1,64], index: 2, kind: input, shape index: {}]   ;;  %s1694_s3 = inlined_call_operand.vmem [shape: f32[64,32], index: 3, kind: input, shape index: {}]   ;;  %s1695_s4 = inlined_call_operand.vmem [shape: f32[1,32], index: 4, kind: input, shape index: {}]   ;;  %s1696_s5 = inlined_call_operand.hbm [shape: f32[32,1000], index: 5, kind: input, shape index: {}]   ;;  %s1697_s6 = inlined_call_operand.vmem [shape: f32[1,1000], index: 6, kind: input, shape index: {}]   ;;  %s1698_s7 = inlined_call_operand.vmem [shape: bf16[20,1000], index: 7, kind: input, shape index: {}]   ;;  %s1699_s8 = inlined_call_operand.vmem [shape: f32[24,1], index: 8, kind: output, shape index: {}]  }
   0x1   :  { %1707 = sst [smem:[#allocation19_spill]] %s1691_s0 }
   0x2   :  { %1708 = sst [smem:[#allocation20_spill]] %s1693_s2 }
   0x3   :  { %1709 = sst [smem:[#allocation21_spill]] %s1694_s3 }
   0x4   :  { %1710 = sst [smem:[#allocation22_spill]] %s1695_s4 }
   0x5   :  { %1711 = sst [smem:[#allocation23_spill]] %s1698_s7 }
   0x6   :  { %13 = vsyncpa [#allocation8], 0 }
   0x7   :  { %15 = vsyncpa [#allocation8 + $0x1], 0 }
   0x8   :  { %16 = vsyncpa [#allocation10], 0  ;;  %s1382_s27 = smov 0   ;;  %s1384_s28 = smov 0  }
   0x9   :  { %s1386_s29 = smov 0   ;;  %s1388_s30 = smov 0  }
   0xa   :  { %s1390_s9 = smov 0   ;;  %s1392_s10 = smov 0  }
   0xb   :  { %s1394_s11 = smov 0   ;;  %s1396_s12 = smov 0  }
   0xc   :  { %s1398_s13 = smov 0   ;;  %s1400_s14 = smov 0  }
   0xd   :  { %s1402_s15 = smov 0  }
   0xe LB: > { %1712 = sst [smem:[#allocation15_spill]] %s1314_s13  ;;  %s31_s16 = sadd.s32 1, %s1314_s13  ;;  %s1322_s15 = sphi %s1402_s15, %s22_s15   ;;  %s1318_s14 = sphi %s1400_s14, %s1734_s14   ;;  %s1314_s13 = sphi %s1398_s13, %s1733_s13   ;;  %s1310_s12 = sphi %s1396_s12, %s1732_s12   ;;  %s1306_s11 = sphi %s1394_s11, %s1731_s11   ;;  %s1302_s10 = sphi %s1392_s10, %s1740_s10   ;;  %s1298_s9 = sphi %s1390_s9, %s1739_s9   ;;  %s1294_s30 = sphi %s1388_s30, %s1738_s30   ;;  %s1290_s29 = sphi %s1386_s29, %s1737_s29   ;;  %s1286_s28 = sphi %s1384_s28, %s1736_s28   ;;  %s1282_s27 = sphi %s1382_s27, %s1735_s27  }
   0xf   : > { %1713 = sst [smem:[#allocation16_spill]] %s1318_s14  ;;  %s34_s17 = sadd.s32 1, %s1318_s14 }
  0x10   : > { %p32_p0 = scmp.ge.s32.totalorder %s31_s16, 4  ;;  %s41_s18 = sadd.s32 1, %s1302_s10 }
  0x11   : > { %p48_p1 = scmp.ne.s32.totalorder %s1302_s10, %s1298_s9  ;;  %p49_p2 = scmp.eq.s32.totalorder %s1322_s15, 0 }
  0x12   : > { %s1742_s16 = smov (%p32_p0, %s31_s16), 0  ;;  %s1744_s17 = smov (!%p32_p0, %s34_s17), %s1318_s14 }
  0x13   : > { %1714 = sst [smem:[#allocation17_spill]] %s1742_s16  ;;  %p1448_p3 = por %p49_p2, %p48_p1 }
  0x14   : > { %p54_p4 = scmp.ne.s32.totalorder %s1298_s9, %s1294_s30  ;;  %p36_p5 = scmp.ge.s32.totalorder %s1744_s17, 3 }
  0x15   : > { %s148_s20 = ssub.s32 %s1314_s13, %s1742_s16  ;;  %s151_s21 = sadd.s32 1, %s1290_s29 }
  0x16   : > { %p149_p6 = scmp.eq.s32.totalorder %s148_s20, 0  ;;  %s1746_s17 = smov (%p36_p5, %s1744_s17), 0 }
  0x17   : > { %1716 = sst [smem:[#allocation18_spill]] %s1746_s17  ;;  %s38_s23 = ssub.s32 %s1318_s14, %s1746_s17 }
  0x18   : > { %s1460_s22 = scalar_select %p149_p6, %s1290_s29, %s151_s21  }
  0x19   : > { %p158_p7 = scmp.ne.s32.totalorder %s1290_s29, %s1286_s28  ;;  %p39_p8 = scmp.eq.s32.totalorder %s38_s23, 0 }
  0x1a   : > { %p164_p9 = scmp.ne.s32.totalorder %s1286_s28, %s1282_s27  ;;  %p1030_p11 = scmp.lt.s32.totalorder %s1322_s15, 12 }
  0x1b   : > { %p160_p10 = por %p158_p7, %p49_p2  ;;  %s290_s25 = sand.u32 1, %s1322_s15  }
  0x1c   : > { %s1471_s24 = scalar_select %p39_p8, %s1302_s10, %s41_s18  }
  0x1d   : > { %s292_s26 = sand.u32 1, %s1302_s10   ;;  %s942_s20 = sshll.u32 %s1318_s14, 7 }
  0x1e   : > { %s941_s16 = sshll.u32 %s292_s26, 3  ;;  %s1717_s0 = sld [smem:[#allocation19_spill]] }
  0x1f   : > { %s294_s7 = scalar_lea.vmem [#allocation7], %s941_s16  ;;  %p1482_p12 = pnand %p1030_p11, %p1448_p3 }
  0x20   : > { %s301_s21 = sshll.u32 %s294_s7, 4  ;;  %p1486_p13 = pnand %p1030_p11, %p160_p10  ;;  %s302_s21 = int_to_ptr.vmem [resolvable:$true] %s301_s21 }
  0x21   : > { %s1490_s23 = scalar_lea.sflag [#allocation8], %s290_s25  ;;  %p1144_p0 = pneg %p1482_p12 }
  0x22   : > { %s1155_s26 = scalar_lea.vmem %s302_s21, 128  ;;  %s1324_s2 = smov [#allocation7]  }
  0x23   : > { %p1156_p1 = scmp.ne.s32.totalorder %s302_s21, %s1155_s26  ;;  %s1160_s4 = sshll.u32 %s1324_s2, 4  ;;  %s1161_s4 = int_to_ptr.vmem [resolvable:$false] %s1160_s4 }
  0x24   : > { %s299_s3 = scalar_lea.hbm %s1717_s0, %s942_s20  ;;  %s1162_s7 = scalar_lea.vmem %s1161_s4, 256 }
  0x25   : > { %p1158_p2 = pnand %p1156_p1, %p1144_p0  ;;  %p1163_p3 = scmp.lt.s32.totalorder %s302_s21, %s1161_s4 }
  0x26   : > { %p1164_p6 = scmp.lt.s32.totalorder %s1162_s7, %s1155_s26 }
  0x27   : > { %p1159_p5 = pneg %p1158_p2 }
  0x28   : > { %p1165_p7 = por %p1164_p6, %p1163_p3 }
  0x2a   : > { %p1166_p8 = pnand %p1165_p7, %p1159_p5 }
  0x2c   : > { %1169 = shalt.err (!%p1166_p8)
}
  0x2d   : > { %1025 = dma.hbm_to_vmem [thread:$0]  (!%p1482_p12), %s299_s3, 128, %s302_s21, %s1490_s23  }
  0x2e   : > { %s1703_s16 = sadd.s32 4294967295, %s1322_s15   ;;  %p938_p10 = scmp.ge.s32.totalorder %s1322_s15, 1 }
  0x2f   : > { %p1501_p11 = scmp.eq.s32.totalorder %s1703_s16, 0  ;;  %p255_p0 = scmp.lt.s32.totalorder %s1322_s15, 13 }
  0x30   : > { %s1325_s20 = smov [#allocation9]   ;;  %s310_s30 = sand.u32 1, %s1290_s29  }
  0x31   : > { %p1511_p1 = por %p1501_p11, %p54_p4  ;;  %p1520_p12 = por %p164_p9, %p1501_p11 }
  0x32   : > { %p1524_p2 = pnand %p938_p10, %p255_p0  ;;  %s267_s21 = sshll.u32 %s1325_s20, 4  ;;  %s268_s21 = int_to_ptr.vmem [resolvable:$true] %s267_s21 }
  0x33   : > { %s1722_s3 = scalar_select %p1520_p12, 1, 0 }
  0x34   : > { %p1018_p5 = pneg %p1524_p2  ;;  %s965_s26 = sshll.u32 %s1314_s13, 8 }
  0x35   : > { %s943_s27 = sshll.u32 %s310_s30, 6  ;;  %s1541_s16 = scalar_lea.hbm %s1696_s5, %s965_s26 }
  0x36   : > { %p1534_p4 = pnand %p1018_p5, %p1501_p11  ;;  %s312_s0 = scalar_lea.vmem [#allocation11], %s943_s27 }
  0x37   : > { %s319_s14 = sshll.u32 %s312_s0, 4  ;;  %s1181_s20 = scalar_lea.vmem %s268_s21, 512  ;;  %s320_s14 = int_to_ptr.vmem [resolvable:$true] %s319_s14 }
  0x38   : > { %p1172_p9 = pneg %p1534_p4  ;;  %p1182_p3 = scmp.ne.s32.totalorder %s268_s21, %s1181_s20 }
  0x39   : > { %p1189_p8 = scmp.lt.s32.totalorder %s268_s21, %s268_s21  ;;  %p1190_p10 = scmp.lt.s32.totalorder %s1181_s20, %s1181_s20 }
  0x3a   : > { %p1184_p6 = pnand %p1182_p3, %p1172_p9 }
  0x3b   : > { %p1191_p0 = por %p1190_p10, %p1189_p8 }
  0x3c   : > { %p1185_p7 = pneg %p1184_p6 }
  0x3e   : > { %p1192_p5 = pnand %p1191_p0, %p1185_p7 }
  0x40   : > { %1195 = shalt.err (!%p1192_p5)
}
  0x41   : > { %s1326_s13 = smov 128   ;;  %s1327_s30 = smov 8  }
  0x42   : > { %1021 = dma.hbm_to_vmem [thread:$0]  (!%p1534_p4), %s1692_s1, 512, %s268_s21, [#allocation10], %s1326_s13, %s1326_s13, %s1327_s30  }
  0x43   : > { %p1198_p12 = pneg %p1486_p13  ;;  %s1209_s0 = scalar_lea.vmem %s320_s14, 1024 }
  0x44   : > { %p1210_p9 = scmp.ne.s32.totalorder %s320_s14, %s1209_s0  ;;  %s1328_s27 = smov [#allocation11]  }
  0x45   : > { %s1214_s7 = sshll.u32 %s1328_s27, 4  ;;  %s1215_s7 = int_to_ptr.vmem [resolvable:$false] %s1214_s7 }
  0x46   : > { %p1212_p3 = pnand %p1210_p9, %p1198_p12  ;;  %s1216_s20 = scalar_lea.vmem %s1215_s7, 2048 }
  0x47   : > { %p1217_p7 = scmp.lt.s32.totalorder %s320_s14, %s1215_s7  ;;  %p1218_p8 = scmp.lt.s32.totalorder %s1216_s20, %s1209_s0 }
  0x48   : > { %p1213_p6 = pneg %p1212_p3 }
  0x49   : > { %p1219_p10 = por %p1218_p8, %p1217_p7 }
  0x4b   : > { %p1220_p0 = pnand %p1219_p10, %p1213_p6 }
  0x4d   : > { %1223 = shalt.err (!%p1220_p0)
}
  0x4e   : > { %s1329_s2 = smov 1024   ;;  %s1330_s13 = smov 256  }
  0x4f   : > { %s1331_s21 = smov 16   ;;  %352 = sbr.rel (%p1524_p2) target bundleno = 1172 (0x494), region = 52 }
  0x50   : > { %1028 = dma.hbm_to_vmem [thread:$0]  (!%p1486_p13), %s1541_s16, 1024, %s320_s14, %s1490_s23, %s1329_s2, %s1330_s13, %s1331_s21  }
  0x51   : > { %s1725_s30 = sadd.s32 (!%p1524_p2), 4294967295, %s1322_s15   ;;  %s356_s4 = sand.u32 (!%p1524_p2), 1, %s1298_s9  }
  0x52   : > { %s354_s26 = sand.u32 (!%p1524_p2), 1, %s1725_s30   ;;  %s1561_s0 = sshll.u32 (!%p1524_p2), %s356_s4, 3 }
  0x53   : > { %s355_s27 = scalar_lea.sflag (!%p1524_p2), [#allocation8], %s354_s26  ;;  %s358_s7 = scalar_lea.vmem (!%p1524_p2), [#allocation7], %s1561_s0 }
  0x54   : > { %1269 = dma.done.wait (%p1511_p1), %s355_s27, 128  }
  0x55   : > { %1271 = vsyncadd (%p1511_p1), %s355_s27, 4294967168 }
  0x56   : > { %1273 = dma.done.wait (%p1501_p11), [#allocation10], 512  }
  0x57   : > { %1275 = vsyncadd (%p1501_p11), [#allocation10], 4294966784  ;;  %s369_s14 = sand.u32 1, %s1286_s28   ;;  %p1726_p13 = scmp.ne.s32.totalorder %s1722_s3, 0 }
  0x58   : > { %s949_s18 = sshll.u32 %s369_s14, 6 }
  0x59   : > { %s1573_s23 = scalar_lea.vmem [#allocation11], %s949_s18 }
  0x5a   : > { %1277 = dma.done.wait (%p1726_p13), %s355_s27, 1024  }
  0x5b   : > { %1279 = vsyncadd (%p1726_p13), %s355_s27, 4294966272  ;;  %s950_s16 = sshll.u32 %s1306_s11, 1  ;;  %p428_p1 = scmp.lt.s32.totalorder %s1310_s12, 2 }
  0x5c   : > { %p423_p12 = scmp.lt.s32.totalorder %s950_s16, 7  ;;  %s1727_s27 = sld [smem:[#allocation23_spill]] }
  0x5d   : > { %s1748_s12 = smov (!%p428_p1, %s1310_s12), 2  ;;  %p955_p11 = scmp.ne.s32.totalorder %s1306_s11, 0 }
  0x5e   : > { %s1750_s16 = smov (!%p423_p12, %s950_s16), 7  ;;  %s952_s19 = sshll.u32 %s1748_s12, 3 }
  0x5f   : > { %s425_s20 = scalar_lea.vmem %s1697_s6, %s1750_s16  ;;  %s433_s2 = sadd.s32 %s952_s19, %s1750_s16 }
  0x60   : > { %s953_s13 = sshll.u32 %s433_s2, 2  ;;  %s1592_s30 = scalar_lea.vmem %s1699_s8, %s952_s19 }
  0x61   : > { %444 = sbr.rel (%p955_p11) target bundleno = 504 (0x1f8), region = 68  ;;  %s1728_s19 = sld [smem:[#allocation21_spill]] (!%p955_p11) }
  0x62   : > { %s1597_s14 = scalar_lea.vmem %s1727_s27, %s953_s13  ;;  %s1729_s13 = sld [smem:[#allocation20_spill]] (!%p955_p11) }
  0x63   : > { %s1730_s26 = sld [smem:[#allocation22_spill]] (!%p955_p11) }
  0x66   : > { %vm622_vm0 = vcmask 7168   ;;  %v449_v0 = vld [vmem:[#allocation9 + $0x18] sm:$0xff]  ;;  %v1332_v1 = vmov 0.0   ;;  %v1333_v2 = vmov -1e+30   ;;  %v448_v3 = vld [vmem:[#allocation9 + $0x10] sm:$0xff] }
  0x67   : > { %980 = vmatprep.subr.mxu0 %v1332_v1  ;;  %623 = vst.msk [vmem:[#allocation3] sm:$0xff] %vm622_vm0, %v1333_v2  ;;  %624 = vst.msk [vmem:[#allocation4] sm:$0xff] %vm622_vm0, %v1332_v1  ;;  %991 = vmatprep.subr.mxu1 %v1332_v1  ;;  %vm1334_vm1 = vmmov 0   ;;  %v539_v4 = vld [vmem:[%s1728_s19 + $0x38] sm:$0xff]  ;;  %v538_v5 = vld [vmem:[%s1728_s19 + $0x30] sm:$0xff]  ;;  %vm457_vm2 = vcmask 261120  }
  0x68   : > { %625 = vst.msk [vmem:[#allocation5] sm:$0xff] %vm622_vm0, %v1332_v1  ;;  %626 = vst.msk [vmem:[#allocation6] sm:$0xff] %vm622_vm0, %v1332_v1  ;;  %981 = vmatpush3.msra.mxu0 %v449_v0  ;;  %988 = vmatprep.mubr.msk.f32.mxu0 %vm1334_vm1, %v1332_v1  ;;  %v447_v6 = vld [vmem:[#allocation9 + $0x8] sm:$0xff]  ;;  %v537_v7 = vld [vmem:[%s1728_s19 + $0x28] sm:$0xff]  ;;  %vm547_vm3 = vcmask 523264  }
  0x69   : > { %982 = vmatprep.subr.mxu0 %v1332_v1  ;;  %992 = vmatpush3.msra.mxu1 %v539_v4  ;;  %v446_v8 = vld [vmem:[#allocation9] sm:$0xff]  ;;  %v445_v9 = vld [vmem:[%s358_s7] sm:$0xff]  ;;  %v536_v10 = vld [vmem:[%s1728_s19 + $0x20] sm:$0xff] }
  0x6a   : > { %983 = vmatpush3.msra.mxu0 %v448_v3  ;;  %993 = vmatprep.subr.mxu1 %v1332_v1  ;;  %v535_v11 = vld [vmem:[%s1728_s19 + $0x18] sm:$0xff]  ;;  %v534_v12 = vld [vmem:[%s1728_s19 + $0x10] sm:$0xff]  ;;  %v533_v13 = vld [vmem:[%s1728_s19 + $0x8] sm:$0xff] }
  0x6b   : > { %984 = vmatprep.subr.mxu0 %v1332_v1  ;;  %994 = vmatpush3.msra.mxu1 %v538_v5  ;;  %v532_v14 = vld [vmem:[%s1728_s19] sm:$0xff] }
  0x6c   : > { %985 = vmatpush3.msra.mxu0 %v447_v6  ;;  %995 = vmatprep.subr.mxu1 %v1332_v1  ;;  %v956_v15 = vld [vmem:[%s1729_s13] ss:$0 sm:$0xff] }
  0x6d   : > { %986 = vmatprep.subr.mxu0 %v1332_v1  ;;  %996 = vmatpush3.msra.mxu1 %v537_v7  ;;  %v958_v20 = vld [vmem:[%s1730_s26] ss:$0 sm:$0xff] }
  0x6e   : > { %987 = vmatpush3.msra.mxu0 %v446_v8  ;;  %997 = vmatprep.subr.mxu1 %v1332_v1 }
  0x6f   : > { %989 = vmatmul.mubr.msk.f32.vlgmr.msra.gmra.mxu0 %vm457_vm2, %v445_v9  ;;  %998 = vmatpush3.msra.mxu1 %v536_v10 }
  0x70   : > { %999 = vmatprep.subr.mxu1 %v1332_v1  ;;  %1007 = vmatprep.mubr.msk.f32.mxu1 %vm1334_vm1, %v1332_v1 }
  0x71   : > { %1000 = vmatpush3.msra.mxu1 %v535_v11 }
  0x72   : > { %1001 = vmatprep.subr.mxu1 %v1332_v1 }
  0x73   : > { %1002 = vmatpush3.msra.mxu1 %v534_v12 }
  0x74   : > { %1003 = vmatprep.subr.mxu1 %v1332_v1 }
  0x75   : > { %1004 = vmatpush3.msra.mxu1 %v533_v13 }
  0x76   : > { %1005 = vmatprep.subr.mxu1 %v1332_v1 }
  0x77   : > { %1006 = vmatpush3.msra.mxu1 %v532_v14 }
 0x12f   : > { %v527_v16 = vpop.f32.mrf.mxu0 }
 0x130   : > { %v528_v17 = vadd.f32 %v956_v15, %v527_v16 }
 0x131   : > { %v990_v18 = vpop.f32.mrf.mxu0 }
 0x132   : > { %v531_v19 = vmax.f32 %v528_v17, 0.0 }
 0x134   : > { %1008 = vmatmul.mubr.msk.f32.vlgmr.msra.gmra.mxu1 %vm547_vm3, %v531_v19 }
 0x1f4   : > { %v617_v21 = vpop.f32.mrf.mxu1 }
 0x1f5   : > { %v618_v22 = vadd.f32 %v958_v20, %v617_v21 }
 0x1f6   : > { %v1009_v23 = vpop.f32.mrf.mxu1 }
 0x1f7   : > { %621 = vst.msk [vmem:[#allocation2] sm:$0xff] %vm457_vm2, %v618_v22 }
 0x1f8 PF: > { %v635_v24 = vld [vmem:[%s1573_s23 + $0x38] sm:$0xff]  ;;  %v634_v25 = vld [vmem:[%s1573_s23 + $0x30] sm:$0xff]  ;;  %v633_v26 = vld [vmem:[%s1573_s23 + $0x28] sm:$0xff]  ;;  %v1335_v28 = vmov 0.0   ;;  %vm648_vm4 = vcmask 261120   ;;  %v638_v34 = vlaneseq  ;;  %s961_s4 = sshll.u32 %s1306_s11, 8 }
 0x1f9   : > { %676 = vmatprep.subr.mxu0 %v635_v24  ;;  %v632_v27 = vld [vmem:[%s1573_s23 + $0x20] sm:$0xff]  ;;  %716 = vmatprep.mubr.f32.mxu0 %v1335_v28  ;;  %v631_v29 = vld [vmem:[%s1573_s23 + $0x18] sm:$0xff]  ;;  %v630_v30 = vld [vmem:[%s1573_s23 + $0x10] sm:$0xff]  ;;  %v730_v39 = vstv %s961_s4  ;;  %v1336_v61 = vmov 0   ;;  %vm768_vm7 = vcmask 7168   ;;  %p962_p2 = scmp.ne.s32.totalorder %s1306_s11, 3 }
 0x1fa   : > { %677 = vmatpush1.msra.mxu0 %v634_v25  ;;  %v629_v31 = vld [vmem:[%s1573_s23 + $0x8] sm:$0xff]  ;;  %v628_v32 = vld [vmem:[%s1573_s23] sm:$0xff]  ;;  %v728_v35 = vand.u32 127, %v638_v34  ;;  %v639_v36 = vshrl.u32 %v638_v34, 7  ;;  %1131 = vset.pattern.permute.xlu0 %v1336_v61  ;;  %v743_v62 = vld [vmem:[#allocation3] sm:$0xff] }
 0x1fb   : > { %678 = vmatprep.subr.mxu0 %v633_v26  ;;  %v636_v40 = vld [vmem:[%s425_s20] sm:$0x3]  ;;  %v771_v0 = vld [vmem:[#allocation5] sm:$0xff]  ;;  %v751_v16 = vld [vmem:[#allocation4] sm:$0xff] }
 0x1fc   : > { %679 = vmatpush1.msra.mxu0 %v632_v27  ;;  %v729_v37 = vadd.s32 128, %v728_v35  ;;  %v640_v38 = vsub.s32 0, %v639_v36  ;;  %v644_v41 = vsub.s32 1, %v639_v36  ;;  %v731_v42 = vadd.s32 %v730_v39, %v728_v35  ;;  %v723_v44 = vld [vmem:[%s1597_s14] sm:$0xff] }
 0x1fd   : > { %680 = vmatprep.subr.mxu0 %v631_v29  ;;  %v724_v47 = vunpack.c.l.bf16 %v723_v44  ;;  %v725_v48 = vunpack.c.h.bf16 %v723_v44  ;;  %v779_v20 = vld [vmem:[#allocation6] sm:$0xff] }
 0x1fe   : > { %681 = vmatpush1.msra.mxu0 %v630_v30  ;;  %v627_v33 = vld [vmem:[#allocation2] sm:$0xff]  ;;  %v732_v43 = vadd.s32 %v730_v39, %v729_v37  ;;  %v641_v45 = vrot.slane %v636_v40, %v640_v38  ;;  %v645_v46 = vrot.slane %v636_v40, %v644_v41  ;;  %vm733_vm5 = vcmp.lt.s32.totalorder %v731_v42, 1000 }
 0x1ff   : > { %682 = vmatprep.subr.mxu0 %v629_v31  ;;  %v741_v54 = vsel %vm733_vm5, %v724_v47, 0.0 }
 0x200   : > { %683 = vmatpush1.msra.mxu0 %v628_v32  ;;  %vm734_vm6 = vcmp.lt.s32.totalorder %v732_v43, 1000 }
 0x201   : > { %960 = vmatmul.mubr.msk.f32.vlgmr.msra.gmra.mxu0 %vm648_vm4, %v627_v33  ;;  %v742_v55 = vsel %vm734_vm6, %v725_v48, 0.0 }
 0x202   : > { %v780_v13 = vadd.f32 %v742_v55, %v741_v54 }
 0x2c1   : > { %v718_v49 = vpop.f32.mrf.mxu0 }
 0x2c2   : > { %v719_v50 = vadd.f32 %v718_v49, %v641_v45 }
 0x2c3   : > { %v720_v51 = vpop.f32.mrf.mxu0 }
 0x2c4   : > { %v721_v52 = vadd.f32 %v720_v51, %v645_v46  ;;  %v739_v53 = vsel %vm733_vm5, %v719_v50, -1e+30 }
 0x2c5   : > { %v772_v58 = vmul.f32 %v741_v54, %v739_v53 }
 0x2c6   : > { %v740_v56 = vsel %vm734_vm6, %v721_v52, -1e+30 }
 0x2c7   : > { %v744_v57 = vmax.f32 %v739_v53, %v740_v56  ;;  %v773_v59 = vmul.f32 %v742_v55, %v740_v56 }
 0x2c9   : > { %745 = vmax.xlane.f32.xlu0 %v744_v57  ;;  %v774_v60 = vadd.f32 %v773_v59, %v772_v58 }
 0x2cb   : > { %775 = vadd.xlane.f32.xlu1 %v774_v60 }
 0x352   : > { %v746_v63 = vpop.xlane.xlu0 %745 }
 0x353   : > { %v747_v1 = vmax.f32 %v743_v62, %v746_v63 }
 0x354   : > { %v776_v2 = vpop.xlane.xlu1 %775 }
 0x355   : > { %v748_v3 = vsub.f32 %v743_v62, %v747_v1  ;;  %770 = vst.msk [vmem:[#allocation3] sm:$0xff] %vm768_vm7, %v747_v1  ;;  %v777_v4 = vadd.f32 %v776_v2, %v771_v0  ;;  %755 = vperm.xlu0 %1131, %v747_v1  }
 0x357   : > { %778 = vst.msk [vmem:[#allocation5] sm:$0xff] %vm768_vm7, %v777_v4  ;;  %v749_v14 = vmul.f32 1.442695, %v748_v3 }
 0x3d0   : > { %v756_v5 = vpop.permute.xlu0 %755 }
 0x3d1   : > { %v758_v6 = vsub.f32 %v739_v53, %v756_v5  ;;  %v759_v7 = vsub.f32 %v740_v56, %v756_v5 }
 0x3d3   : > { %v760_v8 = vmul.f32 1.442695, %v758_v6  ;;  %v762_v9 = vmul.f32 1.442695, %v759_v7 }
 0x3d5   : > { %1132 = vpow2.f32 %v760_v8 }
 0x3d6   : > { %1134 = vpow2.f32 %v762_v9 }
 0x3d7   : > { %1136 = vpow2.f32 %v749_v14 }
 0x3e2   : > { %v1133_v10 = vpop.eup %1132 }
 0x3e3   : > { %v1135_v11 = vpop.eup %1134 }
 0x3e4   : > { %v764_v12 = vadd.f32 %v1135_v11, %v1133_v10  ;;  %v1137_v15 = vpop.eup %1136 }
 0x3e5   : > { %v752_v17 = vmul.f32 %v1137_v15, %v751_v16 }
 0x3e6   : > { %765 = vadd.xlane.f32.xlu1 %v764_v12 }
 0x3ea   : > { %781 = vadd.xlane.f32.xlu1 %v780_v13 }
 0x46f   : > { %v766_v18 = vpop.xlane.xlu1 %765 }
 0x470   : > { %v767_v19 = vadd.f32 %v766_v18, %v752_v17 }
 0x472   : > { %769 = vst.msk [vmem:[#allocation4] sm:$0xff] %vm768_vm7, %v767_v19  ;;  %788 = sbr.rel (%p962_p2) target bundleno = 1172 (0x494), region = 72 }
 0x473   : > { %v782_v21 = vpop.xlane.xlu1 %781 }
 0x474   : > { %v783_v22 = vadd.f32 %v782_v21, %v779_v20 }
 0x476   : > { %784 = vst.msk [vmem:[#allocation6] sm:$0xff] %vm768_vm7, %v783_v22 }
 0x477   : > { %v789_v27 = vld [vmem:[#allocation3] sm:$0xff]  ;;  %v797_v28 = vld [vmem:[#allocation5] sm:$0xff] }
 0x479   : > { %v790_v23 = vld [vmem:[#allocation4] sm:$0xff] }
 0x47a   : > { %1138 = vlog2.f32 %v790_v23 }
 0x47d   : > { %v794_v24 = vld [vmem:[#allocation6] sm:$0xff] }
 0x47e   : > { %vm795_vm8 = vcmp.gt.f32.partialorder %v794_v24, 0.0 }
 0x47f   : > { %v796_v25 = vsel %vm795_vm8, %v794_v24, 1.0 }
 0x480   : > { %1140 = vrcp.f32 %v796_v25 }
 0x487   : > { %v1139_v26 = vpop.eup %1138 }
 0x488   : > { %v792_v29 = vmul.f32 0.6931472, %v1139_v26 }
 0x48a   : > { %v793_v31 = vadd.f32 %v792_v29, %v789_v27 }
 0x48d   : > { %v1141_v30 = vpop.eup %1140 }
 0x48e   : > { %v799_v32 = vmul.f32 %v1141_v30, %v797_v28 }
 0x490   : > { %v800_v33 = vsub.f32 %v799_v32, %v793_v31 }
 0x492   : > { %v801_v34 = vsel %vm795_vm8, %v800_v33, 0.0 }
 0x493   : > { %802 = vst.msk [vmem:[%s1592_s30] sm:$0xff] %vm768_vm7, %v801_v34 }
 0x494 PF: > { %s22_s15 = sadd.s32 1, %s1322_s15   ;;  %s1731_s11 = sld [smem:[#allocation15_spill]] }
 0x495   : > { %p19_p4 = scmp.ge.s32.totalorder %s22_s15, 14   ;;  %s1732_s12 = sld [smem:[#allocation16_spill]] }
 0x496   : > { %s1733_s13 = sld [smem:[#allocation17_spill]]  ;;  %s1735_s27 = smov %s1286_s28 }
 0x497   : > { %s1734_s14 = sld [smem:[#allocation18_spill]]  ;;  %s1736_s28 = smov %s1290_s29 }
 0x498   : > { %s1737_s29 = smov %s1460_s22  ;;  %s1738_s30 = smov %s1298_s9 }
 0x499   : > { %s1739_s9 = smov %s1302_s10  ;;  %s1740_s10 = smov %s1471_s24 }
 0x49a   :  { %21 = sbr.rel (!%p19_p4) target bundleno = 14 (0xe), region = 121 }
 0x49f   :  { %822 = vsyncpa [#allocation8], 1 }
 0x4a0   :  { %824 = vsyncpa [#allocation8 + $0x1], 1 }
 0x4a1   :  { %825 = vsyncpa [#allocation10], 1 }

</bundles_post_ra>
